<compile_context>
chip_gen: v6e
topology: v6e:2x2x1
jax: 0.10.0
libtpu: 0.0.40
codegen_flags: <defaults>
</compile_context>

<pallas_src>
import functools
import math

import jax
import jax.numpy as jnp
from jax.experimental import pallas as pl
from jax.experimental.pallas import tpu as pltpu


def _layernorm(x, w, b, eps=1e-5):
    mu = jnp.mean(x, axis=-1, keepdims=True)
    var = jnp.mean((x - mu) ** 2, axis=-1, keepdims=True)
    return (x - mu) * jax.lax.rsqrt(var + eps) * w + b


def encoder_layer_kernel(src_ref, pos_ref,
                         w_qkv_ref, b_qkv_ref, wo_ref,
                         w1_ref, b1_ref, w2_ref, vec_ref,
                         out_ref, *, nhead):
    """One grid step == one batch element.

    src_ref / pos_ref / out_ref : (S, D)   tokens of one batch element
    w_qkv_ref                   : (3, D, D) W_q (pre-scaled by 1/sqrt(hd)), W_k, W_v  (x @ W)
    b_qkv_ref                   : (3, 1, D) b_q (pre-scaled), b_k, b_v  (f32)
    wo_ref                      : (D, D)    out-projection
    w1_ref / b1_ref / w2_ref    : (D, FF) / (1, FF) / (FF, D)
    vec_ref                     : (6, D)    rows = b_o, b_2, ln1_w, ln1_b, ln2_w, ln2_b (f32)
    """
    f32 = jnp.float32
    cdt = w_qkv_ref.dtype                  # MXU operand dtype (bf16 prod / f32 check)
    S, D = src_ref.shape
    hd = D // nhead

    src = src_ref[...].astype(f32)
    pos = pos_ref[...].astype(f32)
    x_qk = (src + pos).astype(cdt)         # with_pos_embed for q, k
    x_v = src.astype(cdt)                  # value path: no pos

    # Lane-dense projections, K = D contraction, f32 accumulation.
    # 1/sqrt(hd) already folded into w_qkv[0] / b_qkv[0].
    q = jnp.dot(x_qk, w_qkv_ref[0], preferred_element_type=f32) + b_qkv_ref[0]
    k = jnp.dot(x_qk, w_qkv_ref[1], preferred_element_type=f32) + b_qkv_ref[1]
    v = jnp.dot(x_v, w_qkv_ref[2], preferred_element_type=f32) + b_qkv_ref[2]
    q = q.astype(cdt)
    k = k.astype(cdt)
    v = v.astype(cdt)

    # Per-head attention on static lane views of the dense projections.
    # TODO(synk): at production sizes (S in the thousands, hd=64) add a
    # flash-style KV-tile loop (online softmax m/l/acc scratch) and tile the
    # FFN over rows so the (S, S) scores / (S, FF) intermediate stay well
    # under v7x's 64 MiB VMEM.
    head_outs = []
    for h in range(nhead):
        lo = h * hd
        qh = q[:, lo:lo + hd]
        kh = k[:, lo:lo + hd]
        vh = v[:, lo:lo + hd]
        # scores: (S, hd) x (S, hd)^T -> (S, S), accumulated in f32
        s = jax.lax.dot_general(qh, kh, (((1,), (1,)), ((), ())),
                                preferred_element_type=f32)
        s = s - jnp.max(s, axis=-1, keepdims=True)
        p = jnp.exp(s)
        # EUP reciprocal * instead of a VPU divide; approx=True is the
        # production setting, kept exact here for a tight reference check.
        p = p * pl.reciprocal(jnp.sum(p, axis=-1, keepdims=True), approx=False)
        # probabilities cast to the value dtype before the PV matmul
        head_outs.append(jnp.dot(p.astype(cdt), vh, preferred_element_type=f32))

    # Concat over heads -> one lane-dense out-projection matmul with K = D
    # (no (H, S, D) intermediate, no H-way reduction).
    o = jnp.concatenate(head_outs, axis=-1).astype(cdt)

    vec = vec_ref[...].astype(f32)                       # (6, D)
    attn = jnp.dot(o, wo_ref[...], preferred_element_type=f32) + vec[0:1]

    # residual + norm1 (dropout1 = identity in eval)
    x = _layernorm(src + attn, vec[2:3], vec[3:4])

    # FFN: linear1 -> relu -> linear2 (dropout = identity in eval)
    h1 = jnp.dot(x.astype(cdt), w1_ref[...], preferred_element_type=f32) + b1_ref[...]
    h1 = jnp.maximum(h1, 0.0)
    ff = jnp.dot(h1.astype(cdt), w2_ref[...], preferred_element_type=f32) + vec[1:2]

    # residual + norm2 (dropout2 = identity in eval)
    y = _layernorm(x + ff, vec[4:5], vec[5:6])
    out_ref[...] = y.astype(out_ref.dtype)


def transformer_encoder_layer(src, pos, params, *, nhead,
                              compute_dtype=jnp.bfloat16):
    """src, pos: (S, N, D) in PyTorch layout.  Returns (S, N, D).

    forward_post path in eval mode; src_mask / src_key_padding_mask are None.
    """
    S, N, D = src.shape
    hd = D // nhead

    (wq, wk, wv, bq, bk, bv, wo, bo,
     w1, b1, w2, b2, ln1w, ln1b, ln2w, ln2b) = params
    FF = w1.shape[1]

    # --- parameter packing (tiny, weights only; would be stored pre-packed) ---
    scale = 1.0 / math.sqrt(hd)
    w_qkv = jnp.stack([wq * scale, wk, wv]).astype(compute_dtype)   # (3, D, D)
    b_qkv = jnp.stack([bq * scale, bk, bv]).astype(jnp.float32)     # (3, 1, D)
    wo_c = wo.astype(compute_dtype)                                 # (D, D)
    w1_c = w1.astype(compute_dtype)                                 # (D, FF)
    w2_c = w2.astype(compute_dtype)                                 # (FF, D)
    b1_f = b1.astype(jnp.float32)                                   # (1, FF)
    vec_d = jnp.concatenate([bo, b2, ln1w, ln1b, ln2w, ln2b],
                            axis=0).astype(jnp.float32)             # (6, D)

    # One-time (S, N, D) -> (N, S, D) relayout so batch is a grid axis: each
    # step owns one (S, D) slab -> no (T, T) block-diagonal mask, no wasted
    # cross-batch score FLOPs, and the score VMEM is bounded by H*S*S.
    src_nsd = jnp.transpose(src, (1, 0, 2))
    pos_nsd = jnp.transpose(pos, (1, 0, 2))

    tok_spec = pl.BlockSpec((None, S, D), lambda b: (b, 0, 0))

    def resident(arr):  # small weight, resident in VMEM across all grid steps
        nd = arr.ndim
        return pl.BlockSpec(arr.shape, lambda b, _n=nd: (0,) * _n)

    flops = N * (8 * S * D * D + 4 * S * S * D + 4 * S * D * FF)
    transcendentals = N * (nhead * S * S + 4 * S)
    bytes_accessed = (3 * N * S * D * src.dtype.itemsize
                      + sum(int(a.size) * a.dtype.itemsize for a in
                            (w_qkv, b_qkv, wo_c, w1_c, b1_f, w2_c, vec_d)))

    out = pl.pallas_call(
        functools.partial(encoder_layer_kernel, nhead=nhead),
        out_shape=jax.ShapeDtypeStruct((N, S, D), src.dtype),
        grid=(N,),
        in_specs=[tok_spec, tok_spec,
                  resident(w_qkv), resident(b_qkv), resident(wo_c),
                  resident(w1_c), resident(b1_f), resident(w2_c),
                  resident(vec_d)],
        out_specs=tok_spec,
        compiler_params=pltpu.CompilerParams(
            # batch steps are independent -> v7x's two TensorCores split them;
            # harmless on single-TC v5e / v6e.
            dimension_semantics=("parallel",),
            vmem_limit_bytes=32 * 1024 * 1024),
        cost_estimate=pl.CostEstimate(flops=flops,
                                      transcendentals=transcendentals,
                                      bytes_accessed=bytes_accessed),
    )(src_nsd, pos_nsd, w_qkv, b_qkv, wo_c, w1_c, b1_f, w2_c, vec_d)

    return jnp.transpose(out, (1, 0, 2))


# ------------------------- pure-JAX reference ------------------------------
def reference_forward(src, pos, params, *, nhead):
    (wq, wk, wv, bq, bk, bv, wo, bo,
     w1, b1, w2, b2, ln1w, ln1b, ln2w, ln2b) = params
    S, N, D = src.shape
    hd = D // nhead

    def one(src_b, pos_b):
        q_in = src_b + pos_b
        q = q_in @ wq + bq[0]
        k = q_in @ wk + bk[0]
        v = src_b @ wv + bv[0]
        outs = []
        for h in range(nhead):
            qh = q[:, h * hd:(h + 1) * hd] / math.sqrt(hd)
            kh = k[:, h * hd:(h + 1) * hd]
            vh = v[:, h * hd:(h + 1) * hd]
            p = jax.nn.softmax(qh @ kh.T, axis=-1)
            outs.append(p @ vh)
        attn = jnp.concatenate(outs, axis=-1) @ wo + bo[0]
        x = _layernorm(src_b + attn, ln1w[0], ln1b[0])
        ff = jnp.maximum(x @ w1 + b1[0], 0.0) @ w2 + b2[0]
        return _layernorm(x + ff, ln2w[0], ln2b[0])

    return jnp.stack([one(src[:, b], pos[:, b]) for b in range(N)], axis=1)


if __name__ == "__main__":
    S, N, D, H, FF = 8, 2, 32, 4, 64   # seq, batch, d_model, nhead, dim_feedforward

    key = jax.random.PRNGKey(0)
    ks = jax.random.split(key, 14)

    def w(k, shape, scale=0.05):
        return (scale * jax.random.normal(k, shape)).astype(jnp.float32)

    # Parameters stored pre-transposed so the math is x @ W.
    wq = w(ks[0], (D, D)); wk = w(ks[1], (D, D)); wv = w(ks[2], (D, D))
    bq = w(ks[3], (1, D)); bk = w(ks[4], (1, D)); bv = w(ks[5], (1, D))
    wo = w(ks[6], (D, D)); bo = w(ks[7], (1, D))
    w1 = w(ks[8], (D, FF)); b1 = w(ks[9], (1, FF))
    w2 = w(ks[10], (FF, D)); b2 = w(ks[11], (1, D))
    ln1w = jnp.ones((1, D), jnp.float32); ln1b = jnp.zeros((1, D), jnp.float32)
    ln2w = jnp.ones((1, D), jnp.float32); ln2b = jnp.zeros((1, D), jnp.float32)

    params = (wq, wk, wv, bq, bk, bv, wo, bo,
              w1, b1, w2, b2, ln1w, ln1b, ln2w, ln2b)

    src = jax.random.normal(ks[12], (S, N, D), jnp.float32)   # PyTorch layout (S, N, D)
    pos = jax.random.normal(ks[13], (S, N, D), jnp.float32)

    ref = reference_forward(src, pos, params, nhead=H)

    # exact-math path (f32 matmuls): tight check against the reference
    out_f32 = transformer_encoder_layer(src, pos, params, nhead=H,
                                        compute_dtype=jnp.float32)
    out_f32 = jax.block_until_ready(out_f32)
    assert out_f32.shape == (S, N, D)
    assert jnp.allclose(out_f32, ref, atol=2e-4, rtol=2e-4), "f32 mismatch vs reference"

    # production path (bf16 MXU operands, f32 accumulation): loose check
    out_bf16 = transformer_encoder_layer(src, pos, params, nhead=H,
                                         compute_dtype=jnp.bfloat16)
    out_bf16 = jax.block_until_ready(out_bf16)
    assert jnp.allclose(out_bf16, ref, atol=2e-2, rtol=2e-2), "bf16 mismatch vs reference"

    print("KERNEL_OK")
</pallas_src>

<mosaic_0001>
module attributes {stable_mosaic.version = 11 : i64} {
  func.func @encoder_layer_kernel(%arg0: i32, %arg1: memref<1x8x32xf32, #tpu.memory_space<vmem>>, %arg2: memref<1x8x32xf32, #tpu.memory_space<vmem>>, %arg3: memref<3x32x32xf32, #tpu.memory_space<vmem>>, %arg4: memref<3x1x32xf32, #tpu.memory_space<vmem>>, %arg5: memref<32x32xf32, #tpu.memory_space<vmem>>, %arg6: memref<32x64xf32, #tpu.memory_space<vmem>>, %arg7: memref<1x64xf32, #tpu.memory_space<vmem>>, %arg8: memref<64x32xf32, #tpu.memory_space<vmem>>, %arg9: memref<6x32xf32, #tpu.memory_space<vmem>>, %arg10: memref<1x8x32xf32, #tpu.memory_space<vmem>>) attributes {dimension_semantics = [#tpu.dimension_semantics<parallel>], iteration_bounds = array<i64: 2>, scalar_prefetch = 0 : i64, scratch_operands = 0 : i64, tpu.core_type = #tpu.core_type<tc>, window_params = [{transform_indices = @transform_0, window_bounds = array<i64: 1, 8, 32>}, {transform_indices = @transform_1, window_bounds = array<i64: 1, 8, 32>}, {pipeline_mode = #tpu.pipeline_mode<synchronous>, transform_indices = @transform_2, window_bounds = array<i64: 3, 32, 32>}, {pipeline_mode = #tpu.pipeline_mode<synchronous>, transform_indices = @transform_3, window_bounds = array<i64: 3, 1, 32>}, {pipeline_mode = #tpu.pipeline_mode<synchronous>, transform_indices = @transform_4, window_bounds = array<i64: 32, 32>}, {pipeline_mode = #tpu.pipeline_mode<synchronous>, transform_indices = @transform_5, window_bounds = array<i64: 32, 64>}, {pipeline_mode = #tpu.pipeline_mode<synchronous>, transform_indices = @transform_6, window_bounds = array<i64: 1, 64>}, {pipeline_mode = #tpu.pipeline_mode<synchronous>, transform_indices = @transform_7, window_bounds = array<i64: 64, 32>}, {pipeline_mode = #tpu.pipeline_mode<synchronous>, transform_indices = @transform_8, window_bounds = array<i64: 6, 32>}, {transform_indices = @transform_9, window_bounds = array<i64: 1, 8, 32>}]} {
    %c0 = arith.constant 0 : index
    %c0_0 = arith.constant 0 : index
    %c0_1 = arith.constant 0 : index
    %0 = vector.load %arg1[%c0, %c0_0, %c0_1] : memref<1x8x32xf32, #tpu.memory_space<vmem>>, vector<1x8x32xf32>
    %1 = vector.shape_cast %0 : vector<1x8x32xf32> to vector<8x32xf32>
    %c0_2 = arith.constant 0 : index
    %c0_3 = arith.constant 0 : index
    %c0_4 = arith.constant 0 : index
    %2 = vector.load %arg2[%c0_2, %c0_3, %c0_4] : memref<1x8x32xf32, #tpu.memory_space<vmem>>, vector<1x8x32xf32>
    %3 = vector.shape_cast %2 : vector<1x8x32xf32> to vector<8x32xf32>
    %4 = arith.addf %1, %3 : vector<8x32xf32>
    %c0_5 = arith.constant 0 : index
    %c0_6 = arith.constant 0 : index
    %c0_7 = arith.constant 0 : index
    %5 = vector.load %arg3[%c0_5, %c0_6, %c0_7] : memref<3x32x32xf32, #tpu.memory_space<vmem>>, vector<1x32x32xf32>
    %6 = vector.shape_cast %5 : vector<1x32x32xf32> to vector<32x32xf32>
    %cst = arith.constant dense<0.000000e+00> : vector<8x32xf32>
    %7 = tpu.matmul %4, %6, %cst {dimension_numbers = #tpu.dot_dimension_numbers<[1], [0], [0], [1], [0, 0, 1, 1], [], []>} : vector<8x32xf32>, vector<32x32xf32>, vector<8x32xf32> -> vector<8x32xf32>
    %c0_8 = arith.constant 0 : index
    %c0_9 = arith.constant 0 : index
    %c0_10 = arith.constant 0 : index
    %8 = vector.load %arg4[%c0_8, %c0_9, %c0_10] : memref<3x1x32xf32, #tpu.memory_space<vmem>>, vector<1x1x32xf32>
    %9 = vector.shape_cast %8 : vector<1x1x32xf32> to vector<1x32xf32>
    %10 = vector.broadcast %9 : vector<1x32xf32> to vector<8x32xf32>
    %11 = arith.addf %7, %10 : vector<8x32xf32>
    %c1 = arith.constant 1 : index
    %c0_11 = arith.constant 0 : index
    %c0_12 = arith.constant 0 : index
    %12 = vector.load %arg3[%c1, %c0_11, %c0_12] : memref<3x32x32xf32, #tpu.memory_space<vmem>>, vector<1x32x32xf32>
    %13 = vector.shape_cast %12 : vector<1x32x32xf32> to vector<32x32xf32>
    %cst_13 = arith.constant dense<0.000000e+00> : vector<8x32xf32>
    %14 = tpu.matmul %4, %13, %cst_13 {dimension_numbers = #tpu.dot_dimension_numbers<[1], [0], [0], [1], [0, 0, 1, 1], [], []>} : vector<8x32xf32>, vector<32x32xf32>, vector<8x32xf32> -> vector<8x32xf32>
    %c1_14 = arith.constant 1 : index
    %c0_15 = arith.constant 0 : index
    %c0_16 = arith.constant 0 : index
    %15 = vector.load %arg4[%c1_14, %c0_15, %c0_16] : memref<3x1x32xf32, #tpu.memory_space<vmem>>, vector<1x1x32xf32>
    %16 = vector.shape_cast %15 : vector<1x1x32xf32> to vector<1x32xf32>
    %17 = vector.broadcast %16 : vector<1x32xf32> to vector<8x32xf32>
    %18 = arith.addf %14, %17 : vector<8x32xf32>
    %c2 = arith.constant 2 : index
    %c0_17 = arith.constant 0 : index
    %c0_18 = arith.constant 0 : index
    %19 = vector.load %arg3[%c2, %c0_17, %c0_18] : memref<3x32x32xf32, #tpu.memory_space<vmem>>, vector<1x32x32xf32>
    %20 = vector.shape_cast %19 : vector<1x32x32xf32> to vector<32x32xf32>
    %cst_19 = arith.constant dense<0.000000e+00> : vector<8x32xf32>
    %21 = tpu.matmul %1, %20, %cst_19 {dimension_numbers = #tpu.dot_dimension_numbers<[1], [0], [0], [1], [0, 0, 1, 1], [], []>} : vector<8x32xf32>, vector<32x32xf32>, vector<8x32xf32> -> vector<8x32xf32>
    %c2_20 = arith.constant 2 : index
    %c0_21 = arith.constant 0 : index
    %c0_22 = arith.constant 0 : index
    %22 = vector.load %arg4[%c2_20, %c0_21, %c0_22] : memref<3x1x32xf32, #tpu.memory_space<vmem>>, vector<1x1x32xf32>
    %23 = vector.shape_cast %22 : vector<1x1x32xf32> to vector<1x32xf32>
    %24 = vector.broadcast %23 : vector<1x32xf32> to vector<8x32xf32>
    %25 = arith.addf %21, %24 : vector<8x32xf32>
    %26 = vector.extract_strided_slice %11 {offsets = [0, 0], sizes = [8, 8], strides = [1, 1]} : vector<8x32xf32> to vector<8x8xf32>
    %27 = vector.extract_strided_slice %18 {offsets = [0, 0], sizes = [8, 8], strides = [1, 1]} : vector<8x32xf32> to vector<8x8xf32>
    %28 = vector.extract_strided_slice %25 {offsets = [0, 0], sizes = [8, 8], strides = [1, 1]} : vector<8x32xf32> to vector<8x8xf32>
    %cst_23 = arith.constant dense<0.000000e+00> : vector<8x8xf32>
    %29 = tpu.matmul %26, %27, %cst_23 {dimension_numbers = #tpu.dot_dimension_numbers<[1], [1], [0], [0], [0, 0, 1, 0], [], []>} : vector<8x8xf32>, vector<8x8xf32>, vector<8x8xf32> -> vector<8x8xf32>
    %cst_24 = arith.constant dense<0xFF800000> : vector<8xf32>
    %30 = vector.multi_reduction <maximumf>, %29, %cst_24 [1] : vector<8x8xf32> to vector<8xf32>
    %31 = vector.shape_cast %30 : vector<8xf32> to vector<8x1xf32>
    %32 = vector.broadcast %31 : vector<8x1xf32> to vector<8x8xf32>
    %33 = arith.subf %29, %32 : vector<8x8xf32>
    %34 = math.exp %33 : vector<8x8xf32>
    %cst_25 = arith.constant dense<0.000000e+00> : vector<8xf32>
    %35 = vector.multi_reduction <add>, %34, %cst_25 [1] : vector<8x8xf32> to vector<8xf32>
    %36 = vector.shape_cast %35 : vector<8xf32> to vector<8x1xf32>
    %37 = tpu.reciprocal %36 : vector<8x1xf32> -> vector<8x1xf32>
    %38 = vector.broadcast %37 : vector<8x1xf32> to vector<8x8xf32>
    %39 = arith.mulf %34, %38 : vector<8x8xf32>
    %cst_26 = arith.constant dense<0.000000e+00> : vector<8x8xf32>
    %40 = tpu.matmul %39, %28, %cst_26 {dimension_numbers = #tpu.dot_dimension_numbers<[1], [0], [0], [1], [0, 0, 1, 1], [], []>} : vector<8x8xf32>, vector<8x8xf32>, vector<8x8xf32> -> vector<8x8xf32>
    %41 = vector.extract_strided_slice %11 {offsets = [0, 8], sizes = [8, 8], strides = [1, 1]} : vector<8x32xf32> to vector<8x8xf32>
    %42 = vector.extract_strided_slice %18 {offsets = [0, 8], sizes = [8, 8], strides = [1, 1]} : vector<8x32xf32> to vector<8x8xf32>
    %43 = vector.extract_strided_slice %25 {offsets = [0, 8], sizes = [8, 8], strides = [1, 1]} : vector<8x32xf32> to vector<8x8xf32>
    %cst_27 = arith.constant dense<0.000000e+00> : vector<8x8xf32>
    %44 = tpu.matmul %41, %42, %cst_27 {dimension_numbers = #tpu.dot_dimension_numbers<[1], [1], [0], [0], [0, 0, 1, 0], [], []>} : vector<8x8xf32>, vector<8x8xf32>, vector<8x8xf32> -> vector<8x8xf32>
    %cst_28 = arith.constant dense<0xFF800000> : vector<8xf32>
    %45 = vector.multi_reduction <maximumf>, %44, %cst_28 [1] : vector<8x8xf32> to vector<8xf32>
    %46 = vector.shape_cast %45 : vector<8xf32> to vector<8x1xf32>
    %47 = vector.broadcast %46 : vector<8x1xf32> to vector<8x8xf32>
    %48 = arith.subf %44, %47 : vector<8x8xf32>
    %49 = math.exp %48 : vector<8x8xf32>
    %cst_29 = arith.constant dense<0.000000e+00> : vector<8xf32>
    %50 = vector.multi_reduction <add>, %49, %cst_29 [1] : vector<8x8xf32> to vector<8xf32>
    %51 = vector.shape_cast %50 : vector<8xf32> to vector<8x1xf32>
    %52 = tpu.reciprocal %51 : vector<8x1xf32> -> vector<8x1xf32>
    %53 = vector.broadcast %52 : vector<8x1xf32> to vector<8x8xf32>
    %54 = arith.mulf %49, %53 : vector<8x8xf32>
    %cst_30 = arith.constant dense<0.000000e+00> : vector<8x8xf32>
    %55 = tpu.matmul %54, %43, %cst_30 {dimension_numbers = #tpu.dot_dimension_numbers<[1], [0], [0], [1], [0, 0, 1, 1], [], []>} : vector<8x8xf32>, vector<8x8xf32>, vector<8x8xf32> -> vector<8x8xf32>
    %56 = vector.extract_strided_slice %11 {offsets = [0, 16], sizes = [8, 8], strides = [1, 1]} : vector<8x32xf32> to vector<8x8xf32>
    %57 = vector.extract_strided_slice %18 {offsets = [0, 16], sizes = [8, 8], strides = [1, 1]} : vector<8x32xf32> to vector<8x8xf32>
    %58 = vector.extract_strided_slice %25 {offsets = [0, 16], sizes = [8, 8], strides = [1, 1]} : vector<8x32xf32> to vector<8x8xf32>
    %cst_31 = arith.constant dense<0.000000e+00> : vector<8x8xf32>
    %59 = tpu.matmul %56, %57, %cst_31 {dimension_numbers = #tpu.dot_dimension_numbers<[1], [1], [0], [0], [0, 0, 1, 0], [], []>} : vector<8x8xf32>, vector<8x8xf32>, vector<8x8xf32> -> vector<8x8xf32>
    %cst_32 = arith.constant dense<0xFF800000> : vector<8xf32>
    %60 = vector.multi_reduction <maximumf>, %59, %cst_32 [1] : vector<8x8xf32> to vector<8xf32>
    %61 = vector.shape_cast %60 : vector<8xf32> to vector<8x1xf32>
    %62 = vector.broadcast %61 : vector<8x1xf32> to vector<8x8xf32>
    %63 = arith.subf %59, %62 : vector<8x8xf32>
    %64 = math.exp %63 : vector<8x8xf32>
    %cst_33 = arith.constant dense<0.000000e+00> : vector<8xf32>
    %65 = vector.multi_reduction <add>, %64, %cst_33 [1] : vector<8x8xf32> to vector<8xf32>
    %66 = vector.shape_cast %65 : vector<8xf32> to vector<8x1xf32>
    %67 = tpu.reciprocal %66 : vector<8x1xf32> -> vector<8x1xf32>
    %68 = vector.broadcast %67 : vector<8x1xf32> to vector<8x8xf32>
    %69 = arith.mulf %64, %68 : vector<8x8xf32>
    %cst_34 = arith.constant dense<0.000000e+00> : vector<8x8xf32>
    %70 = tpu.matmul %69, %58, %cst_34 {dimension_numbers = #tpu.dot_dimension_numbers<[1], [0], [0], [1], [0, 0, 1, 1], [], []>} : vector<8x8xf32>, vector<8x8xf32>, vector<8x8xf32> -> vector<8x8xf32>
    %71 = vector.extract_strided_slice %11 {offsets = [0, 24], sizes = [8, 8], strides = [1, 1]} : vector<8x32xf32> to vector<8x8xf32>
    %72 = vector.extract_strided_slice %18 {offsets = [0, 24], sizes = [8, 8], strides = [1, 1]} : vector<8x32xf32> to vector<8x8xf32>
    %73 = vector.extract_strided_slice %25 {offsets = [0, 24], sizes = [8, 8], strides = [1, 1]} : vector<8x32xf32> to vector<8x8xf32>
    %cst_35 = arith.constant dense<0.000000e+00> : vector<8x8xf32>
    %74 = tpu.matmul %71, %72, %cst_35 {dimension_numbers = #tpu.dot_dimension_numbers<[1], [1], [0], [0], [0, 0, 1, 0], [], []>} : vector<8x8xf32>, vector<8x8xf32>, vector<8x8xf32> -> vector<8x8xf32>
    %cst_36 = arith.constant dense<0xFF800000> : vector<8xf32>
    %75 = vector.multi_reduction <maximumf>, %74, %cst_36 [1] : vector<8x8xf32> to vector<8xf32>
    %76 = vector.shape_cast %75 : vector<8xf32> to vector<8x1xf32>
    %77 = vector.broadcast %76 : vector<8x1xf32> to vector<8x8xf32>
    %78 = arith.subf %74, %77 : vector<8x8xf32>
    %79 = math.exp %78 : vector<8x8xf32>
    %cst_37 = arith.constant dense<0.000000e+00> : vector<8xf32>
    %80 = vector.multi_reduction <add>, %79, %cst_37 [1] : vector<8x8xf32> to vector<8xf32>
    %81 = vector.shape_cast %80 : vector<8xf32> to vector<8x1xf32>
    %82 = tpu.reciprocal %81 : vector<8x1xf32> -> vector<8x1xf32>
    %83 = vector.broadcast %82 : vector<8x1xf32> to vector<8x8xf32>
    %84 = arith.mulf %79, %83 : vector<8x8xf32>
    %cst_38 = arith.constant dense<0.000000e+00> : vector<8x8xf32>
    %85 = tpu.matmul %84, %73, %cst_38 {dimension_numbers = #tpu.dot_dimension_numbers<[1], [0], [0], [1], [0, 0, 1, 1], [], []>} : vector<8x8xf32>, vector<8x8xf32>, vector<8x8xf32> -> vector<8x8xf32>
    %86 = tpu.concatenate %40, %55, %70, %85 in 1 : vector<8x8xf32>, vector<8x8xf32>, vector<8x8xf32>, vector<8x8xf32> -> vector<8x32xf32>
    %c0_39 = arith.constant 0 : index
    %c0_40 = arith.constant 0 : index
    %87 = vector.load %arg9[%c0_39, %c0_40] : memref<6x32xf32, #tpu.memory_space<vmem>>, vector<6x32xf32>
    %c0_41 = arith.constant 0 : index
    %c0_42 = arith.constant 0 : index
    %88 = vector.load %arg5[%c0_41, %c0_42] : memref<32x32xf32, #tpu.memory_space<vmem>>, vector<32x32xf32>
    %cst_43 = arith.constant dense<0.000000e+00> : vector<8x32xf32>
    %89 = tpu.matmul %86, %88, %cst_43 {dimension_numbers = #tpu.dot_dimension_numbers<[1], [0], [0], [1], [0, 0, 1, 1], [], []>} : vector<8x32xf32>, vector<32x32xf32>, vector<8x32xf32> -> vector<8x32xf32>
    %90 = vector.extract_strided_slice %87 {offsets = [0, 0], sizes = [1, 32], strides = [1, 1]} : vector<6x32xf32> to vector<1x32xf32>
    %91 = vector.broadcast %90 : vector<1x32xf32> to vector<8x32xf32>
    %92 = arith.addf %89, %91 : vector<8x32xf32>
    %93 = arith.addf %1, %92 : vector<8x32xf32>
    %94 = vector.extract_strided_slice %87 {offsets = [2, 0], sizes = [1, 32], strides = [1, 1]} : vector<6x32xf32> to vector<1x32xf32>
    %95 = vector.extract_strided_slice %87 {offsets = [3, 0], sizes = [1, 32], strides = [1, 1]} : vector<6x32xf32> to vector<1x32xf32>
    %cst_44 = arith.constant dense<0.000000e+00> : vector<8xf32>
    %96 = vector.multi_reduction <add>, %93, %cst_44 [1] : vector<8x32xf32> to vector<8xf32>
    %97 = vector.shape_cast %96 : vector<8xf32> to vector<8x1xf32>
    %cst_45 = arith.constant 3.200000e+01 : f32
    %98 = vector.broadcast %cst_45 : f32 to vector<8x1xf32>
    %99 = arith.divf %97, %98 : vector<8x1xf32>
    %100 = vector.broadcast %99 : vector<8x1xf32> to vector<8x32xf32>
    %101 = arith.subf %93, %100 : vector<8x32xf32>
    %102 = arith.mulf %101, %101 : vector<8x32xf32>
    %cst_46 = arith.constant dense<0.000000e+00> : vector<8xf32>
    %103 = vector.multi_reduction <add>, %102, %cst_46 [1] : vector<8x32xf32> to vector<8xf32>
    %104 = vector.shape_cast %103 : vector<8xf32> to vector<8x1xf32>
    %cst_47 = arith.constant 3.200000e+01 : f32
    %105 = vector.broadcast %cst_47 : f32 to vector<8x1xf32>
    %106 = arith.divf %104, %105 : vector<8x1xf32>
    %107 = vector.broadcast %99 : vector<8x1xf32> to vector<8x32xf32>
    %108 = arith.subf %93, %107 : vector<8x32xf32>
    %cst_48 = arith.constant 9.99999974E-6 : f32
    %109 = vector.broadcast %cst_48 : f32 to vector<8x1xf32>
    %110 = arith.addf %106, %109 : vector<8x1xf32>
    %111 = math.rsqrt %110 : vector<8x1xf32>
    %112 = vector.broadcast %111 : vector<8x1xf32> to vector<8x32xf32>
    %113 = arith.mulf %108, %112 : vector<8x32xf32>
    %114 = vector.broadcast %94 : vector<1x32xf32> to vector<8x32xf32>
    %115 = arith.mulf %113, %114 : vector<8x32xf32>
    %116 = vector.broadcast %95 : vector<1x32xf32> to vector<8x32xf32>
    %117 = arith.addf %115, %116 : vector<8x32xf32>
    %c0_49 = arith.constant 0 : index
    %c0_50 = arith.constant 0 : index
    %118 = vector.load %arg6[%c0_49, %c0_50] : memref<32x64xf32, #tpu.memory_space<vmem>>, vector<32x64xf32>
    %cst_51 = arith.constant dense<0.000000e+00> : vector<8x64xf32>
    %119 = tpu.matmul %117, %118, %cst_51 {dimension_numbers = #tpu.dot_dimension_numbers<[1], [0], [0], [1], [0, 0, 1, 1], [], []>} : vector<8x32xf32>, vector<32x64xf32>, vector<8x64xf32> -> vector<8x64xf32>
    %c0_52 = arith.constant 0 : index
    %c0_53 = arith.constant 0 : index
    %120 = vector.load %arg7[%c0_52, %c0_53] : memref<1x64xf32, #tpu.memory_space<vmem>>, vector<1x64xf32>
    %121 = vector.broadcast %120 : vector<1x64xf32> to vector<8x64xf32>
    %122 = arith.addf %119, %121 : vector<8x64xf32>
    %cst_54 = arith.constant 0.000000e+00 : f32
    %123 = vector.broadcast %cst_54 : f32 to vector<8x64xf32>
    %124 = arith.maximumf %122, %123 : vector<8x64xf32>
    %c0_55 = arith.constant 0 : index
    %c0_56 = arith.constant 0 : index
    %125 = vector.load %arg8[%c0_55, %c0_56] : memref<64x32xf32, #tpu.memory_space<vmem>>, vector<64x32xf32>
    %cst_57 = arith.constant dense<0.000000e+00> : vector<8x32xf32>
    %126 = tpu.matmul %124, %125, %cst_57 {dimension_numbers = #tpu.dot_dimension_numbers<[1], [0], [0], [1], [0, 0, 1, 1], [], []>} : vector<8x64xf32>, vector<64x32xf32>, vector<8x32xf32> -> vector<8x32xf32>
    %127 = vector.extract_strided_slice %87 {offsets = [1, 0], sizes = [1, 32], strides = [1, 1]} : vector<6x32xf32> to vector<1x32xf32>
    %128 = vector.broadcast %127 : vector<1x32xf32> to vector<8x32xf32>
    %129 = arith.addf %126, %128 : vector<8x32xf32>
    %130 = arith.addf %117, %129 : vector<8x32xf32>
    %131 = vector.extract_strided_slice %87 {offsets = [4, 0], sizes = [1, 32], strides = [1, 1]} : vector<6x32xf32> to vector<1x32xf32>
    %132 = vector.extract_strided_slice %87 {offsets = [5, 0], sizes = [1, 32], strides = [1, 1]} : vector<6x32xf32> to vector<1x32xf32>
    %cst_58 = arith.constant dense<0.000000e+00> : vector<8xf32>
    %133 = vector.multi_reduction <add>, %130, %cst_58 [1] : vector<8x32xf32> to vector<8xf32>
    %134 = vector.shape_cast %133 : vector<8xf32> to vector<8x1xf32>
    %cst_59 = arith.constant 3.200000e+01 : f32
    %135 = vector.broadcast %cst_59 : f32 to vector<8x1xf32>
    %136 = arith.divf %134, %135 : vector<8x1xf32>
    %137 = vector.broadcast %136 : vector<8x1xf32> to vector<8x32xf32>
    %138 = arith.subf %130, %137 : vector<8x32xf32>
    %139 = arith.mulf %138, %138 : vector<8x32xf32>
    %cst_60 = arith.constant dense<0.000000e+00> : vector<8xf32>
    %140 = vector.multi_reduction <add>, %139, %cst_60 [1] : vector<8x32xf32> to vector<8xf32>
    %141 = vector.shape_cast %140 : vector<8xf32> to vector<8x1xf32>
    %cst_61 = arith.constant 3.200000e+01 : f32
    %142 = vector.broadcast %cst_61 : f32 to vector<8x1xf32>
    %143 = arith.divf %141, %142 : vector<8x1xf32>
    %144 = vector.broadcast %136 : vector<8x1xf32> to vector<8x32xf32>
    %145 = arith.subf %130, %144 : vector<8x32xf32>
    %cst_62 = arith.constant 9.99999974E-6 : f32
    %146 = vector.broadcast %cst_62 : f32 to vector<8x1xf32>
    %147 = arith.addf %143, %146 : vector<8x1xf32>
    %148 = math.rsqrt %147 : vector<8x1xf32>
    %149 = vector.broadcast %148 : vector<8x1xf32> to vector<8x32xf32>
    %150 = arith.mulf %145, %149 : vector<8x32xf32>
    %151 = vector.broadcast %131 : vector<1x32xf32> to vector<8x32xf32>
    %152 = arith.mulf %150, %151 : vector<8x32xf32>
    %153 = vector.broadcast %132 : vector<1x32xf32> to vector<8x32xf32>
    %154 = arith.addf %152, %153 : vector<8x32xf32>
    %c0_63 = arith.constant 0 : index
    %c0_64 = arith.constant 0 : index
    %c0_65 = arith.constant 0 : index
    %155 = vector.load %arg10[%c0_63, %c0_64, %c0_65] : memref<1x8x32xf32, #tpu.memory_space<vmem>>, vector<1x8x32xf32>
    %156 = vector.shape_cast %155 : vector<1x8x32xf32> to vector<8x32xf32>
    %157 = vector.shape_cast %154 : vector<8x32xf32> to vector<1x8x32xf32>
    tpu.vector_store %arg10[%c0_63, %c0_64, %c0_65], %157 {strides = array<i32>} : memref<1x8x32xf32, #tpu.memory_space<vmem>>, vector<1x8x32xf32>,
    return
  }
  func.func @transform_0(%arg0: i32) -> (i32, i32, i32) {
    %c0_i32 = arith.constant 0 : i32
    %c0_i32_0 = arith.constant 0 : i32
    %c0_i32_1 = arith.constant 0 : i32
    return %arg0, %c0_i32, %c0_i32_0 : i32, i32, i32
  }
  func.func @transform_1(%arg0: i32) -> (i32, i32, i32) {
    %c0_i32 = arith.constant 0 : i32
    %c0_i32_0 = arith.constant 0 : i32
    %c0_i32_1 = arith.constant 0 : i32
    return %arg0, %c0_i32, %c0_i32_0 : i32, i32, i32
  }
  func.func @transform_2(%arg0: i32) -> (i32, i32, i32) {
    %c0_i32 = arith.constant 0 : i32
    %c0_i32_0 = arith.constant 0 : i32
    %c0_i32_1 = arith.constant 0 : i32
    %c0_i32_2 = arith.constant 0 : i32
    return %c0_i32, %c0_i32_0, %c0_i32_1 : i32, i32, i32
  }
  func.func @transform_3(%arg0: i32) -> (i32, i32, i32) {
    %c0_i32 = arith.constant 0 : i32
    %c0_i32_0 = arith.constant 0 : i32
    %c0_i32_1 = arith.constant 0 : i32
    %c0_i32_2 = arith.constant 0 : i32
    return %c0_i32, %c0_i32_0, %c0_i32_1 : i32, i32, i32
  }
  func.func @transform_4(%arg0: i32) -> (i32, i32) {
    %c0_i32 = arith.constant 0 : i32
    %c0_i32_0 = arith.constant 0 : i32
    %c0_i32_1 = arith.constant 0 : i32
    return %c0_i32, %c0_i32_0 : i32, i32
  }
  func.func @transform_5(%arg0: i32) -> (i32, i32) {
    %c0_i32 = arith.constant 0 : i32
    %c0_i32_0 = arith.constant 0 : i32
    %c0_i32_1 = arith.constant 0 : i32
    return %c0_i32, %c0_i32_0 : i32, i32
  }
  func.func @transform_6(%arg0: i32) -> (i32, i32) {
    %c0_i32 = arith.constant 0 : i32
    %c0_i32_0 = arith.constant 0 : i32
    %c0_i32_1 = arith.constant 0 : i32
    return %c0_i32, %c0_i32_0 : i32, i32
  }
  func.func @transform_7(%arg0: i32) -> (i32, i32) {
    %c0_i32 = arith.constant 0 : i32
    %c0_i32_0 = arith.constant 0 : i32
    %c0_i32_1 = arith.constant 0 : i32
    return %c0_i32, %c0_i32_0 : i32, i32
  }
  func.func @transform_8(%arg0: i32) -> (i32, i32) {
    %c0_i32 = arith.constant 0 : i32
    %c0_i32_0 = arith.constant 0 : i32
    %c0_i32_1 = arith.constant 0 : i32
    return %c0_i32, %c0_i32_0 : i32, i32
  }
  func.func @transform_9(%arg0: i32) -> (i32, i32, i32) {
    %c0_i32 = arith.constant 0 : i32
    %c0_i32_0 = arith.constant 0 : i32
    %c0_i32_1 = arith.constant 0 : i32
    return %arg0, %c0_i32, %c0_i32_0 : i32, i32, i32
  }
}

</mosaic_0001>

<bundles_post_ra>
// kernel: tpu_custom_call.1
= control target key start
LH: loop header
LB: loop body
LE: loop exit
PB: predicated region body
PF: predicated region fallthrough
CT: control target
= control target key end

     0   :  { %s2831_s0 = inlined_call_operand.hbm [shape: f32[2,8,32], index: 0, kind: input, shape index: {}]   ;;  %s2832_s1 = inlined_call_operand.hbm [shape: f32[2,8,32], index: 1, kind: input, shape index: {}]   ;;  %s2833_s2 = inlined_call_operand.vmem [shape: f32[3,32,32], index: 2, kind: input, shape index: {}]   ;;  %s2834_s3 = inlined_call_operand.hbm [shape: f32[3,1,32], index: 3, kind: input, shape index: {}]   ;;  %s2835_s4 = inlined_call_operand.hbm [shape: f32[32,32], index: 4, kind: input, shape index: {}]   ;;  %s2836_s5 = inlined_call_operand.hbm [shape: f32[32,64], index: 5, kind: input, shape index: {}]   ;;  %s2837_s6 = inlined_call_operand.vmem [shape: f32[1,64], index: 6, kind: input, shape index: {}]   ;;  %s2838_s7 = inlined_call_operand.vmem [shape: f32[64,32], index: 7, kind: input, shape index: {}]   ;;  %s2839_s8 = inlined_call_operand.vmem [shape: f32[6,32], index: 8, kind: input, shape index: {}]   ;;  %s2840_s9 = inlined_call_operand.hbm [shape: f32[2,8,32], index: 9, kind: output, shape index: {}]  }
   0x1   :  { %2848 = sst [smem:[#allocation20_spill]] %s2834_s3 }
   0x2   :  { %2849 = sst [smem:[#allocation21_spill]] %s2835_s4 }
   0x3   :  { %2850 = sst [smem:[#allocation22_spill]] %s2836_s5 }
   0x4   :  { %14 = vsyncpa [#allocation3], 0 }
   0x5   :  { %16 = vsyncpa [#allocation3 + $0x1], 0 }
   0x6   :  { %17 = vsyncpa [#allocation6], 0 }
   0x7   :  { %19 = vsyncpa [#allocation6 + $0x1], 0 }
   0x8   :  { %20 = vsyncpa [#allocation9], 0 }
   0x9   :  { %21 = vsyncpa [#allocation4], 0 }
   0xa   :  { %23 = vsyncpa [#allocation4 + $0x1], 0  ;;  %s2406_s30 = smov 0   ;;  %s2408_s10 = smov 0  }
   0xb   :  { %s2410_s11 = smov 0   ;;  %s2412_s12 = smov 0  }
   0xc LB: > { %2851 = sst [smem:[#allocation17_spill]] %s2332_s11  ;;  %s2427_s13 = sadd.s32 4294967295, %s2336_s12   ;;  %s2336_s12 = sphi %s2412_s12, %s2872_s12   ;;  %s2332_s11 = sphi %s2410_s11, %s2874_s11   ;;  %s2328_s10 = sphi %s2408_s10, %s2876_s10   ;;  %s2324_s30 = sphi %s2406_s30, %s2875_s30  }
   0xd   : > { %s1797_s14 = sadd.s32 4294967294, %s2336_s12   ;;  %p49_p0 = scmp.ne.s32.totalorder %s2328_s10, %s2324_s30 }
   0xe   : > { %p2844_p1 = scmp.eq.s32.totalorder %s2427_s13, 0  ;;  %p246_p2 = scmp.eq.s32.totalorder %s2427_s13, 1 }
   0xf   : > { %p252_p3 = scmp.eq.s32.totalorder %s1797_s14, 1  ;;  %p1798_p5 = scmp.ge.s32.totalorder %s2336_s12, 1 }
  0x10   : > { %p2436_p4 = por %p2844_p1, %p49_p0  ;;  %p259_p7 = scmp.lt.s32.totalorder %s2336_s12, 3 }
  0x11   : > { %p2441_p6 = por %p252_p3, %p49_p0  ;;  %s2338_s18 = smov [#allocation7]  }
  0x12   : > { %s2852_s15 = scalar_select %p2436_p4, 1, 0 }
  0x13   : > { %s2853_s16 = scalar_select %p2441_p6, 1, 0 }
  0x14   : > { %p2446_p8 = pnand %p1798_p5, %p259_p7  ;;  %s274_s19 = sshll.u32 %s2338_s18, 4  ;;  %s275_s19 = int_to_ptr.vmem [resolvable:$true] %s274_s19 }
  0x15   : > { %s2339_s21 = smov [#allocation8]   ;;  %s2137_s23 = scalar_lea.vmem %s275_s19, 48 }
  0x16   : > { %s2854_s17 = scalar_select %p2446_p8, 1, 0 }
  0x17   : > { %p2030_p9 = pneg %p2446_p8  ;;  %s287_s22 = sshll.u32 %s2339_s21, 4  ;;  %s2459_s22 = int_to_ptr.vmem [resolvable:$true] %s287_s22 }
  0x18   : > { %p2138_p13 = scmp.ne.s32.totalorder %s275_s19, %s2137_s23  ;;  %s2144_s24 = scalar_lea.vmem %s275_s19, 64 }
  0x19   : > { %p2455_p11 = pnand %p2030_p9, %p2844_p1  ;;  %p2145_p5 = scmp.lt.s32.totalorder %s275_s19, %s275_s19 }
  0x1a   : > { %p2146_p7 = scmp.lt.s32.totalorder %s2144_s24, %s2137_s23 }
  0x1b   : > { %p2128_p12 = pneg %p2455_p11 }
  0x1c   : > { %p2147_p9 = por %p2146_p7, %p2145_p5 }
  0x1d   : > { %p2140_p0 = pnand %p2138_p13, %p2128_p12 }
  0x1f   : > { %p2141_p3 = pneg %p2140_p0 }
  0x21   : > { %p2148_p10 = pnand %p2147_p9, %p2141_p3 }
  0x23   : > { %2151 = shalt.err (!%p2148_p10)
}
  0x24   : > { %s2340_s25 = smov 16   ;;  %s2341_s26 = smov 1  }
  0x25   : > { %s2856_s3 = sld [smem:[#allocation20_spill]]  ;;  %s2163_s29 = scalar_lea.vmem %s2459_s22, 512 }
  0x26   : > { %p2164_p13 = scmp.ne.s32.totalorder %s2459_s22, %s2163_s29  ;;  %p2171_p10 = scmp.lt.s32.totalorder %s2459_s22, %s2459_s22 }
  0x27   : > { %p2172_p3 = scmp.lt.s32.totalorder %s2163_s29, %s2163_s29 }
  0x28   : > { %p2166_p0 = pnand %p2164_p13, %p2128_p12 }
  0x29   : > { %p2173_p7 = por %p2172_p3, %p2171_p10 }
  0x2a   : > { %p2167_p5 = pneg %p2166_p0 }
  0x2b   : > { %2033 = dma.hbm_to_vmem [thread:$0]  (!%p2455_p11), %s2856_s3, 48, %s275_s19, [#allocation6], %s2340_s25, %s2340_s25, %s2341_s26  }
  0x2c   : > { %p2174_p9 = pnand %p2173_p7, %p2167_p5 }
  0x2e   : > { %2177 = shalt.err (!%p2174_p9)
}
  0x2f   : > { %s2342_s14 = smov 128   ;;  %s2343_s18 = smov 8  }
  0x30   : > { %s2857_s4 = sld [smem:[#allocation21_spill]]  ;;  %s2344_s23 = smov [#allocation10]  }
  0x31   : > { %s300_s24 = sshll.u32 %s2344_s23, 4  ;;  %s2485_s25 = sadd.s32 1, %s2336_s12   ;;  %s301_s24 = int_to_ptr.vmem [resolvable:$true] %s300_s24 }
  0x32   : > { %2858 = sst [smem:[#allocation18_spill]] %s2485_s25  ;;  %s2189_s26 = scalar_lea.vmem %s301_s24, 512 }
  0x33   : > { %p2190_p13 = scmp.ne.s32.totalorder %s301_s24, %s2189_s26  ;;  %p2197_p10 = scmp.lt.s32.totalorder %s301_s24, %s301_s24 }
  0x34   : > { %p2198_p3 = scmp.lt.s32.totalorder %s2189_s26, %s2189_s26 }
  0x35   : > { %p2192_p0 = pnand %p2190_p13, %p2128_p12 }
  0x36   : > { %2036 = dma.hbm_to_vmem [thread:$0]  (!%p2455_p11), %s2857_s4, 512, %s2459_s22, [#allocation9], %s2342_s14, %s2342_s14, %s2343_s18  }
  0x37   : > { %p2193_p5 = pneg %p2192_p0  ;;  %p2199_p7 = por %p2198_p3, %p2197_p10 }
  0x39   : > { %p2200_p9 = pnand %p2199_p7, %p2193_p5 }
  0x3b   : > { %2203 = shalt.err (!%p2200_p9)
}
  0x3c   : > { %s2859_s5 = sld [smem:[#allocation22_spill]]  ;;  %s33_s28 = ssub.s32 %s2336_s12, %s2485_s25 }
  0x3d   : > { %s36_s29 = sadd.s32 1, %s2332_s11  ;;  %p34_p12 = scmp.eq.s32.totalorder %s33_s28, 0 }
  0x3e   : > { %p43_p13 = scmp.ne.s32.totalorder %s2332_s11, %s2328_s10  ;;  %p44_p0 = scmp.eq.s32.totalorder %s2336_s12, 0 }
  0x3f   : > { %p2054_p5 = scmp.lt.s32.totalorder %s2336_s12, 2  ;;  %s323_s21 = sand.u32 1, %s2332_s11  }
  0x40   : > { %s2503_s20 = scalar_select %p34_p12, %s2332_s11, %s36_s29  }
  0x41   : > { %p45_p10 = por %p44_p0, %p43_p13  ;;  %p2507_p3 = por %p246_p2, %p43_p13 }
  0x42   : > { %2039 = dma.hbm_to_vmem [thread:$0]  (!%p2455_p11), %s2859_s5, 512, %s301_s24, [#allocation9], %s2342_s14, %s2342_s14, %s2343_s18  }
  0x43   : > { %2860 = sst [smem:[#allocation19_spill]] %s2503_s20  ;;  %s1804_s23 = sshll.u32 %s2336_s12, 7 }
  0x44   : > { %s2861_s19 = scalar_select %p2507_p3, 1, 0 }
  0x45   : > { %s2513_s26 = sshll.u32 %s323_s21, 3  ;;  %s2518_s18 = scalar_lea.hbm %s2831_s0, %s1804_s23 }
  0x46   : > { %s327_s24 = scalar_lea.vmem [#allocation2], %s2513_s26  ;;  %p2521_p11 = pnand %p2054_p5, %p45_p10 }
  0x47   : > { %s334_s22 = sshll.u32 %s327_s24, 4  ;;  %s2528_s4 = scalar_lea.hbm %s2832_s1, %s1804_s23  ;;  %s335_s22 = int_to_ptr.vmem [resolvable:$true] %s334_s22 }
  0x48   : > { %s324_s27 = scalar_lea.sflag [#allocation3], %s323_s21  ;;  %s2204_s14 = scalar_lea.hbm %s2518_s18, 128 }
  0x49   : > { %p2205_p2 = scmp.ne.s32.totalorder %s2518_s18, %s2204_s14  ;;  %p2206_p7 = pneg %p2521_p11 }
  0x4a   : > { %s2209_s20 = scalar_lea.hbm %s2831_s0, 256  ;;  %p2210_p13 = scmp.lt.s32.totalorder %s2518_s18, %s2831_s0 }
  0x4b   : > { %p2207_p9 = pnand %p2206_p7, %p2205_p2  ;;  %p2211_p0 = scmp.lt.s32.totalorder %s2209_s20, %s2204_s14 }
  0x4d   : > { %p2208_p12 = pneg %p2207_p9  ;;  %p2212_p5 = por %p2211_p0, %p2210_p13 }
  0x4f   : > { %p2213_p10 = pnand %p2212_p5, %p2208_p12 }
  0x51   : > { %2216 = shalt.err (!%p2213_p10)
}
  0x52   : > { %s2217_s3 = scalar_lea.vmem %s335_s22, 128  ;;  %s2345_s21 = smov [#allocation2]  }
  0x53   : > { %p2218_p1 = scmp.ne.s32.totalorder %s335_s22, %s2217_s3  ;;  %s2222_s23 = sshll.u32 %s2345_s21, 4  ;;  %s2223_s23 = int_to_ptr.vmem [resolvable:$false] %s2222_s23 }
  0x54   : > { %s2224_s5 = scalar_lea.vmem %s2223_s23, 256  ;;  %p2225_p9 = scmp.lt.s32.totalorder %s335_s22, %s2223_s23 }
  0x55   : > { %p2220_p6 = pnand %p2218_p1, %p2206_p7  ;;  %p2226_p3 = scmp.lt.s32.totalorder %s2224_s5, %s2217_s3 }
  0x57   : > { %p2221_p2 = pneg %p2220_p6  ;;  %p2227_p4 = por %p2226_p3, %p2225_p9 }
  0x59   : > { %p2228_p8 = pnand %p2227_p4, %p2221_p2 }
  0x5b   : > { %2231 = shalt.err (!%p2228_p8)
}
  0x5c   : > { %2043 = dma.hbm_to_vmem [thread:$0]  (!%p2521_p11), %s2518_s18, 128, %s335_s22, %s324_s27  }
  0x5d   : > { %s341_s11 = sand.u32 1, %s2336_s12   ;;  %s345_s25 = scalar_lea.vmem [#allocation5], %s2513_s26 }
  0x5e   : > { %s352_s20 = sshll.u32 %s345_s25, 4  ;;  %s342_s29 = scalar_lea.sflag [#allocation6], %s341_s11  ;;  %s353_s20 = int_to_ptr.vmem [resolvable:$true] %s352_s20 }
  0x5f   : > { %s2232_s14 = scalar_lea.hbm %s2528_s4, 128  ;;  %s2237_s21 = scalar_lea.hbm %s2832_s1, 256 }
  0x60   : > { %p2233_p1 = scmp.ne.s32.totalorder %s2528_s4, %s2232_s14  ;;  %p2238_p8 = scmp.lt.s32.totalorder %s2528_s4, %s2832_s1 }
  0x61   : > { %p2239_p3 = scmp.lt.s32.totalorder %s2237_s21, %s2232_s14 }
  0x62   : > { %p2235_p4 = pnand %p2233_p1, %p2206_p7 }
  0x63   : > { %p2240_p12 = por %p2239_p3, %p2238_p8 }
  0x64   : > { %p2236_p6 = pneg %p2235_p4 }
  0x66   : > { %p2241_p13 = pnand %p2240_p12, %p2236_p6 }
  0x68   : > { %2244 = shalt.err (!%p2241_p13)
}
  0x69   : > { %s2245_s26 = scalar_lea.vmem %s353_s20, 128  ;;  %s2346_s18 = smov [#allocation5]  }
  0x6a   : > { %p2246_p0 = scmp.ne.s32.totalorder %s353_s20, %s2245_s26  ;;  %s2250_s22 = sshll.u32 %s2346_s18, 4  ;;  %s2251_s22 = int_to_ptr.vmem [resolvable:$false] %s2250_s22 }
  0x6b   : > { %s2252_s27 = scalar_lea.vmem %s2251_s22, 256  ;;  %p2253_p2 = scmp.lt.s32.totalorder %s353_s20, %s2251_s22 }
  0x6c   : > { %p2248_p5 = pnand %p2246_p0, %p2206_p7  ;;  %p2254_p9 = scmp.lt.s32.totalorder %s2252_s27, %s2245_s26 }
  0x6e   : > { %p2249_p10 = pneg %p2248_p5  ;;  %p2255_p1 = por %p2254_p9, %p2253_p2 }
  0x70   : > { %p2256_p4 = pnand %p2255_p1, %p2249_p10 }
  0x72   : > { %2259 = shalt.err (!%p2256_p4)
}
  0x73   : > { %2046 = dma.hbm_to_vmem [thread:$0]  (!%p2521_p11), %s2528_s4, 128, %s353_s20, %s342_s29  }
  0x74   : > { %p2863_p6 = scmp.ne.s32.totalorder %s2854_s17, 0 }
  0x75   : > { %s2573_s11 = sand.u32 (!%p2863_p6), 1, %s2328_s10   ;;  %p2864_p7 = scmp.ne.s32.totalorder (!%p2863_p6), %s2852_s15, 0 }
  0x76   : > { %361 = sbr.rel (%p2863_p6) target bundleno = 2509 (0x9cd), region = 56  ;;  %s2576_s25 = sshll.u32 (!%p2863_p6), %s2573_s11, 3 }
  0x77   : > { %s364_s14 = scalar_lea.sflag (!%p2863_p6), [#allocation3], %s2573_s11  ;;  %s367_s24 = scalar_lea.vmem (!%p2863_p6), [#allocation2], %s2576_s25 }
  0x7b   : > { %2303 = dma.done.wait (%p2864_p7), %s364_s14, 128  }
  0x7c   : > { %2305 = vsyncadd (%p2864_p7), %s364_s14, 4294967168  ;;  %s372_s4 = sand.u32 1, %s2427_s13   ;;  %s376_s28 = scalar_lea.vmem [#allocation5], %s2576_s25 }
  0x7d   : > { %s373_s17 = scalar_lea.sflag [#allocation6], %s372_s4 }
  0x7e   : > { %2307 = dma.done.wait (%p2864_p7), %s373_s17, 128  }
  0x7f   : > { %2309 = vsyncadd (%p2864_p7), %s373_s17, 4294967168  ;;  %p2865_p11 = scmp.eq.s32.totalorder %s2427_s13, 0 }
  0x81   : > { %2311 = dma.done.wait (%p2865_p11), [#allocation6], 48   ;;  %p2866_p8 = pmov %p2865_p11 }
  0x83   : > { %2313 = vsyncadd (%p2866_p8), [#allocation6], 4294967248  ;;  %p2867_p3 = pmov %p2866_p8 }
  0x85   : > { %2315 = dma.done.wait (%p2867_p3), [#allocation9], 1024   ;;  %p2868_p12 = pmov %p2867_p3 }
  0x86   : > { %v2347_v0 = vmov 0.0   ;;  %vm2348_vm0 = vmmov 0   ;;  %v434_v1 = vld [vmem:[%s2833_s2 + $0x18] sm:$0xff]  ;;  %v433_v2 = vld [vmem:[%s2833_s2 + $0x10] sm:$0xff]  ;;  %v2610_v3 = vld [vmem:[%s367_s24] sm:$0xff]  ;;  %vm442_vm1 = vcmask 261120  }
  0x87   : > { %2317 = vsyncadd (%p2868_p12), [#allocation9], 4294966272  ;;  %1898 = vmatprep.subr.mxu1 %v2347_v0  ;;  %1906 = vmatprep.mubr.msk.f32.mxu1 %vm2348_vm0, %v2347_v0  ;;  %v429_v4 = vld [vmem:[%s376_s28] sm:$0xff]  ;;  %v432_v5 = vld [vmem:[%s2833_s2 + $0x8] sm:$0xff]  ;;  %vm685_vm2 = vcmask 64512   ;;  %s2349_s18 = smov 112  }
  0x88   : > { %1920 = vmatprep.subr.mxu0 %v2347_v0  ;;  %1928 = vmatprep.mubr.msk.f32.mxu0 %vm2348_vm0, %v2347_v0  ;;  %v431_v6 = vld [vmem:[%s2833_s2] sm:$0xff]  ;;  %v430_v7 = vadd.f32 %v429_v4, %v2610_v3  ;;  %v1819_v8 = vld [vmem:[%s2833_s2 + $0x38] sm:$0xff]  ;;  %v1818_v9 = vld [vmem:[%s2833_s2 + $0x30] sm:$0xff]  ;;  %s2350_s22 = smov 120   ;;  %s2351_s27 = smov 104   ;;  %vm1355_vm3 = vcmask 130048  }
  0x89   : > { %1899 = vmatpush3.msra.mxu1 %v434_v1  ;;  %v1817_v10 = vld [vmem:[%s2833_s2 + $0x28] sm:$0xff]  ;;  %v1816_v11 = vld [vmem:[%s2833_s2 + $0x20] sm:$0xff]  ;;  %v1825_v12 = vld [vmem:[%s2833_s2 + $0x58] sm:$0xff]  ;;  %s2352_s14 = smov 8   ;;  %s2353_s24 = smov 16   ;;  %vm1357_vm4 = vcmask 195584  }
  0x8a   : > { %1900 = vmatprep.subr.mxu1 %v2347_v0  ;;  %v1824_v13 = vld [vmem:[%s2833_s2 + $0x50] sm:$0xff]  ;;  %1921 = vmatpush3.msra.mxu0 %v1825_v12  ;;  %v1823_v14 = vld [vmem:[%s2833_s2 + $0x48] sm:$0xff]  ;;  %v1822_v15 = vld [vmem:[%s2833_s2 + $0x40] sm:$0xff]  ;;  %s2354_s4 = smov 24   ;;  %vm1563_vm5 = vcmask 523264   ;;  %s1845_s29 = sshll.u32 %s2427_s13, 7 }
  0x8b   : > { %1901 = vmatpush3.msra.mxu1 %v433_v2  ;;  %1922 = vmatprep.subr.mxu0 %v2347_v0  ;;  %v1820_v18 = vld [vmem:[#allocation7 + $0x1] ss:$0 sm:$0xff]  ;;  %v1814_v21 = vld [vmem:[#allocation7] ss:$0 sm:$0xff]  ;;  %v1826_v24 = vld [vmem:[#allocation7 + $0x2] ss:$0 sm:$0xff]  ;;  %s1674_s26 = scalar_lea.hbm %s2840_s9, %s1845_s29 }
  0x8c   : > { %1902 = vmatprep.subr.mxu1 %v2347_v0  ;;  %1923 = vmatpush3.msra.mxu0 %v1824_v13  ;;  %s427_s3 = scalar_lea.vmem [#allocation11], %s2576_s25  ;;  %p2869_p0 = scmp.ne.s32.totalorder %s2861_s19, 0 }
  0x8d   : > { %1903 = vmatpush3.msra.mxu1 %v432_v5  ;;  %1924 = vmatprep.subr.mxu0 %v2347_v0  ;;  %s1676_s21 = sshll.u32 %s427_s3, 4  ;;  %s1677_s21 = int_to_ptr.vmem [resolvable:$true] %s1676_s21 }
  0x8e   : > { %1904 = vmatprep.subr.mxu1 %v2347_v0  ;;  %1925 = vmatpush3.msra.mxu0 %v1823_v14 }
  0x8f   : > { %1905 = vmatpush3.msra.mxu1 %v431_v6  ;;  %1926 = vmatprep.subr.mxu0 %v2347_v0 }
  0x90   : > { %1907 = vmatmul.mubr.msk.f32.vlgmr.msra.gmra.mxu1 %vm442_vm1, %v430_v7  ;;  %1909 = vmatprep.subr.mxu1 %v2347_v0 }
  0x91   : > { %1910 = vmatpush3.msra.mxu1 %v1819_v8  ;;  %1917 = vmatprep.mubr.msk.f32.mxu1 %vm2348_vm0, %v2347_v0 }
  0x92   : > { %1911 = vmatprep.subr.mxu1 %v2347_v0  ;;  %1927 = vmatpush3.msra.mxu0 %v1822_v15 }
  0x93   : > { %1912 = vmatpush3.msra.mxu1 %v1818_v9  ;;  %1929 = vmatmul.mubr.msk.f32.vlgmr.msra.gmra.mxu0 %vm442_vm1, %v2610_v3 }
  0x94   : > { %1913 = vmatprep.subr.mxu1 %v2347_v0  ;;  %1941 = vmatprep.subr.mxu0 %v2347_v0 }
  0x95   : > { %1914 = vmatpush3.msra.mxu1 %v1817_v10  ;;  %1943 = vmatprep.mubr.msk.f32.mxu0 %vm2348_vm0, %v2347_v0 }
  0x96   : > { %1915 = vmatprep.subr.mxu1 %v2347_v0 }
  0x97   : > { %1916 = vmatpush3.msra.mxu1 %v1816_v11 }
  0x98   : > { %1918 = vmatmul.mubr.msk.f32.vlgmr.msra.gmra.mxu1 %vm442_vm1, %v430_v7  ;;  %1931 = vmatprep.subr.mxu1 %v2347_v0 }
  0x99   : > { %1933 = vmatprep.mubr.msk.f32.mxu1 %vm2348_vm0, %v2347_v0 }
 0x150   : > { %v512_v16 = vpop.f32.mrf.mxu1 }
 0x151   : > { %v513_v23 = vadd.f32 %v1814_v21, %v512_v16  ;;  %v1363_v21 = vld [vmem:[#allocation8 + $0x18] sm:$0xff] }
 0x152   : > { %v1908_v17 = vpop.f32.mrf.mxu1 }
 0x153   : > { %v681_v25 = vpop.f32.mrf.mxu0 }
 0x154   : > { %v2676_v26 = vadd.f32 %v1826_v24, %v681_v25  ;;  %v1360_v24 = vld [vmem:[#allocation8] sm:$0xff] }
 0x155   : > { %v1930_v27 = vpop.f32.mrf.mxu0 }
 0x158   : > { %v595_v19 = vpop.f32.mrf.mxu1 }
 0x159   : > { %v596_v20 = vadd.f32 %v1820_v18, %v595_v19 }
 0x15a   : > { %v1919_v22 = vpop.f32.mrf.mxu1 }
 0x15b   : > { %1014 = vrot.lane.b32.xlu1 %v596_v20, %s2349_s18  ;;  %848 = vrot.lane.b32.xlu0 %v596_v20, %s2350_s22  ;;  %v1362_v22 = vld [vmem:[#allocation8 + $0x10] sm:$0xff] }
 0x15c   : > { %1932 = vmatpush3.xpose.msk.msra.mxu1 %vm685_vm2, %v596_v20 }
 0x15d   : > { %1936 = vmatprep.subr.mxu1 %v2347_v0 }
 0x15f   : > { %1934 = vmatmul.mubr.msk.f32.vlgmr.msra.gmra.mxu1 %vm685_vm2, %v513_v23  ;;  %1012 = vrot.lane.b32.xlu1 %v513_v23, %s2349_s18 }
 0x160   : > { %846 = vrot.lane.b32.xlu0 %v513_v23, %s2350_s22  ;;  %1938 = vmatprep.mubr.msk.f32.mxu1 %vm2348_vm0, %v2347_v0 }
 0x161   : > { %1937 = vmatpush3.msra.mxu1 %v2676_v26 }
 0x162   : > { %1946 = vmatprep.subr.mxu1 %v2347_v0 }
 0x163   : > { %1177 = vrot.lane.b32.xlu1 %v513_v23, %s2351_s27  ;;  %v1361_v23 = vld [vmem:[#allocation8 + $0x8] sm:$0xff] }
 0x164   : > { %1179 = vrot.lane.b32.xlu0 %v596_v20, %s2351_s27 }
 0x1cd   : > { %v849_v28 = vpop.permute.xlu0 %848  ;;  %v1015_v29 = vpop.permute.xlu1 %1014 }
 0x1ce   : > { %1942 = vmatpush3.xpose.msk.msra.mxu0 %vm685_vm2, %v849_v28 }
 0x1cf   : > { %1951 = vmatprep.subr.mxu0 %v2347_v0 }
 0x1d1   : > { %v1013_v31 = vpop.permute.xlu1 %1012 }
 0x1d2   : > { %v847_v30 = vpop.permute.xlu0 %846 }
 0x1d3   : > { %1944 = vmatmul.mubr.msk.f32.vlgmr.msra.gmra.mxu0 %vm685_vm2, %v847_v30 }
 0x1d4   : > { %1952 = vmatpush3.xpose.msk.msra.mxu0 %vm685_vm2, %v1015_v29  ;;  %1953 = vmatprep.mubr.msk.f32.mxu0 %vm2348_vm0, %v2347_v0 }
 0x1d5   : > { %1961 = vmatprep.subr.mxu0 %v2347_v0  ;;  %v1178_v33 = vpop.permute.xlu1 %1177 }
 0x1d6   : > { %v1180_v32 = vpop.permute.xlu0 %1179 }
 0x1d7   : > { %1954 = vmatmul.mubr.msk.f32.vlgmr.msra.gmra.mxu0 %vm685_vm2, %v1013_v31 }
 0x1d8   : > { %1962 = vmatpush3.xpose.msk.msra.mxu0 %vm685_vm2, %v1180_v32  ;;  %1963 = vmatprep.mubr.msk.f32.mxu0 %vm2348_vm0, %v2347_v0 }
 0x1d9   : > { %1971 = vmatprep.subr.mxu0 %v2347_v0 }
 0x1db   : > { %1964 = vmatmul.mubr.msk.f32.vlgmr.msra.gmra.mxu0 %vm685_vm2, %v1178_v33 }
 0x1dc   : > { %1979 = vmatprep.mubr.msk.f32.mxu0 %vm2348_vm0, %v2347_v0  ;;  %1972 = vmatpush3.msra.mxu0 %v1363_v21 }
 0x1dd   : > { %1973 = vmatprep.subr.mxu0 %v2347_v0 }
 0x1de   : > { %1974 = vmatpush3.msra.mxu0 %v1362_v22 }
 0x1df   : > { %1975 = vmatprep.subr.mxu0 %v2347_v0 }
 0x1e0   : > { %1976 = vmatpush3.msra.mxu0 %v1361_v23 }
 0x1e1   : > { %1977 = vmatprep.subr.mxu0 %v2347_v0 }
 0x1e2   : > { %1978 = vmatpush3.msra.mxu0 %v1360_v24 }
 0x1e3   : > { %1993 = vmatprep.subr.mxu0 %v2347_v0 }
 0x21f   : > { %v758_v34 = vpop.f32.mrf.mxu1 }
 0x220   : > { %v762_v35 = vsel %vm685_vm2, %v758_v34, -inf }
 0x221   : > { %763 = vmax.xlane.f32.xlu0 %v762_v35  ;;  %v1935_v36 = vpop.f32.mrf.mxu1 }
 0x293   : > { %v920_v37 = vpop.f32.mrf.mxu0 }
 0x294   : > { %v924_v38 = vsel %vm685_vm2, %v920_v37, -inf }
 0x295   : > { %925 = vmax.xlane.f32.xlu1 %v924_v38  ;;  %v1945_v39 = vpop.f32.mrf.mxu0 }
 0x297   : > { %v1086_v40 = vpop.f32.mrf.mxu0 }
 0x298   : > { %v1090_v41 = vsel %vm685_vm2, %v1086_v40, -inf }
 0x299   : > { %v1955_v42 = vpop.f32.mrf.mxu0  ;;  %1091 = vmax.xlane.f32.xlu0 %v1090_v41 }
 0x29b   : > { %v1251_v43 = vpop.f32.mrf.mxu0 }
 0x29c   : > { %v1255_v44 = vsel %vm685_vm2, %v1251_v43, -inf }
 0x29d   : > { %v1965_v45 = vpop.f32.mrf.mxu0  ;;  %1256 = vmax.xlane.f32.xlu0 %v1255_v44 }
 0x2a6   : > { %936 = vrot.lane.b32.xlu1 %v2676_v26, %s2350_s22  ;;  %s2260_s22 = scalar_lea.vmem %s1677_s21, 128 }
 0x2a7   : > { %p2261_p13 = scmp.ne.s32.totalorder %s1677_s21, %s2260_s22 }
 0x2a9   : > { %p2262_p5 = pnand %p2261_p13, %p2869_p0 }
 0x2aa   : > { %v764_v46 = vpop.xlane.xlu0 %763 }
 0x2ab   : > { %v765_v47 = vsub.f32 %v758_v34, %v764_v46  ;;  %p2263_p10 = pneg %p2262_p5 }
 0x2ad   : > { %v766_v48 = vmul.f32 1.442695, %v765_v47 }
 0x2af   : > { %2106 = vpow2.f32 %v766_v48 }
 0x2bc   : > { %v2107_v49 = vpop.eup %2106 }
 0x2bd   : > { %v768_v50 = vsel %vm685_vm2, %v2107_v49, 0.0 }
 0x2ca   : > { %769 = vadd.xlane.f32.xlu1 %v768_v50 }
 0x31e   : > { %v926_v51 = vpop.xlane.xlu1 %925 }
 0x31f   : > { %v927_v52 = vsub.f32 %v920_v37, %v926_v51  ;;  %v1364_v37 = vlaneseq }
 0x321   : > { %v928_v53 = vmul.f32 1.442695, %v927_v52  ;;  %v2732_v38 = vshrl.u32 %v1364_v37, 7  ;;  %v1469_v52 = vld [vmem:[#allocation10 + $0x18] sm:$0xff] }
 0x322   : > { %v1092_v54 = vpop.xlane.xlu0 %1091  ;;  %v937_v4 = vpop.permute.xlu1 %936 }
 0x323   : > { %2108 = vpow2.f32 %v928_v53  ;;  %v1093_v55 = vsub.f32 %v1086_v40, %v1092_v54  ;;  %v1366_v39 = vsub.s32 0, %v2732_v38  ;;  %v2738_v40 = vld [vmem:[%s2839_s8] sm:$0x3f]  ;;  %v1468_v53 = vld [vmem:[#allocation10 + $0x10] sm:$0xff]  ;;  %v1467_v54 = vld [vmem:[#allocation10 + $0x8] sm:$0xff] }
 0x325   : > { %v1094_v56 = vmul.f32 1.442695, %v1093_v55  ;;  %v1367_v41 = vrot.slane %v2738_v40, %v1366_v39  ;;  %v1558_v55 = vld [vmem:[%s2838_s7 + $0x38] sm:$0xff] }
 0x326   : > { %v1257_v57 = vpop.xlane.xlu0 %1256 }
 0x327   : > { %2110 = vpow2.f32 %v1094_v56  ;;  %v1258_v58 = vsub.f32 %v1251_v43, %v1257_v57  ;;  %v1557_v56 = vld [vmem:[%s2838_s7 + $0x30] sm:$0xff]  ;;  %v1556_v57 = vld [vmem:[%s2838_s7 + $0x28] sm:$0xff] }
 0x329   : > { %v1259_v59 = vmul.f32 1.442695, %v1258_v58  ;;  %v1555_v58 = vld [vmem:[%s2838_s7 + $0x20] sm:$0xff] }
 0x32b   : > { %2112 = vpow2.f32 %v1259_v59  ;;  %v1554_v59 = vld [vmem:[%s2838_s7 + $0x18] sm:$0xff] }
 0x330   : > { %v2109_v60 = vpop.eup %2108 }
 0x331   : > { %v930_v61 = vsel %vm685_vm2, %v2109_v60, 0.0 }
 0x332   : > { %931 = vadd.xlane.f32.xlu0 %v930_v61 }
 0x334   : > { %v2111_v62 = vpop.eup %2110 }
 0x335   : > { %v1096_v63 = vsel %vm685_vm2, %v2111_v62, 0.0 }
 0x336   : > { %1097 = vadd.xlane.f32.xlu1 %v1096_v63  ;;  %v1458_v63 = vsub.s32 2, %v2732_v38 }
 0x338   : > { %v2113_v1 = vpop.eup %2112 }
 0x339   : > { %v1261_v2 = vsel %vm685_vm2, %v2113_v1, 0.0 }
 0x33a   : > { %1262 = vadd.xlane.f32.xlu0 %v1261_v2  ;;  %v1459_v2 = vrot.slane %v2738_v40, %v1458_v63 }
 0x347   : > { %1266 = vrot.lane.b32.xlu1 %v2676_v26, %s2351_s27  ;;  %s2355_s27 = smov [#allocation11]  }
 0x350   : > { %1101 = vrot.lane.b32.xlu0 %v2676_v26, %s2349_s18  ;;  %s1663_s18 = scalar_lea.sflag [#allocation4], %s2573_s11 }
 0x353   : > { %v770_v5 = vpop.xlane.xlu1 %769 }
 0x354   : > { %2114 = vrcp.f32 %v770_v5 }
 0x361   : > { %v2115_v6 = vpop.eup %2114 }
 0x362   : > { %v772_v7 = vmul.f32 %v2115_v6, %v2107_v49 }
 0x364   : > { %1939 = vmatmul.mubr.msk.f32.vlgmr.msra.gmra.mxu1 %vm685_vm2, %v772_v7 }
 0x365   : > { %1947 = vmatpush3.msra.mxu1 %v937_v4  ;;  %1948 = vmatprep.mubr.msk.f32.mxu1 %vm2348_vm0, %v2347_v0 }
 0x366   : > { %1956 = vmatprep.subr.mxu1 %v2347_v0 }
 0x3bb   : > { %v932_v8 = vpop.xlane.xlu0 %931 }
 0x3bc   : > { %2116 = vrcp.f32 %v932_v8 }
 0x3bf   : > { %v1098_v9 = vpop.xlane.xlu1 %1097 }
 0x3c0   : > { %2118 = vrcp.f32 %v1098_v9  ;;  %v1553_v9 = vld [vmem:[%s2838_s7 + $0x10] sm:$0xff] }
 0x3c3   : > { %v1263_v10 = vpop.xlane.xlu0 %1262  ;;  %v1267_v16 = vpop.permute.xlu1 %1266 }
 0x3c4   : > { %2120 = vrcp.f32 %v1263_v10  ;;  %v1552_v10 = vld [vmem:[%s2838_s7 + $0x8] sm:$0xff] }
 0x3c7   : > { %v1102_v13 = vpop.permute.xlu0 %1101 }
 0x3c9   : > { %v2117_v11 = vpop.eup %2116 }
 0x3ca   : > { %v934_v12 = vmul.f32 %v2117_v11, %v2109_v60  ;;  %v1551_v11 = vld [vmem:[%s2838_s7] sm:$0xff] }
 0x3cc   : > { %1949 = vmatmul.mubr.msk.f32.vlgmr.msra.gmra.mxu1 %vm685_vm2, %v934_v12  ;;  %v1841_v12 = vld [vmem:[%s2837_s6] ss:$0 sm:$0xff] }
 0x3cd   : > { %v2119_v14 = vpop.eup %2118  ;;  %1957 = vmatpush3.msra.mxu1 %v1102_v13  ;;  %1958 = vmatprep.mubr.msk.f32.mxu1 %vm2348_vm0, %v2347_v0 }
 0x3ce   : > { %1966 = vmatprep.subr.mxu1 %v2347_v0  ;;  %v1100_v15 = vmul.f32 %v2119_v14, %v2111_v62 }
 0x3d0   : > { %1959 = vmatmul.mubr.msk.f32.vlgmr.msra.gmra.mxu1 %vm685_vm2, %v1100_v15 }
 0x3d1   : > { %v2121_v17 = vpop.eup %2120  ;;  %1967 = vmatpush3.msra.mxu1 %v1267_v16  ;;  %1968 = vmatprep.mubr.msk.f32.mxu1 %vm2348_vm0, %v2347_v0 }
 0x3d2   : > { %v1265_v18 = vmul.f32 %v2121_v17, %v2113_v1  ;;  %1982 = vmatprep.subr.mxu1 %v2347_v0  ;;  %v1463_v1 = vsub.s32 3, %v2732_v38  ;;  %v1561_v17 = vsub.s32 1, %v2732_v38 }
 0x3d4   : > { %1969 = vmatmul.mubr.msk.f32.vlgmr.msra.gmra.mxu1 %vm685_vm2, %v1265_v18  ;;  %v1464_v6 = vrot.slane %v2738_v40, %v1463_v1  ;;  %v1562_v18 = vrot.slane %v2738_v40, %v1561_v17 }
 0x3d5   : > { %1990 = vmatprep.mubr.msk.f32.mxu1 %vm2348_vm0, %v2347_v0  ;;  %1983 = vmatpush3.msra.mxu1 %v1469_v52 }
 0x3d6   : > { %1984 = vmatprep.subr.mxu1 %v2347_v0 }
 0x3d7   : > { %1985 = vmatpush3.msra.mxu1 %v1468_v53 }
 0x3d8   : > { %1986 = vmatprep.subr.mxu1 %v2347_v0 }
 0x3d9   : > { %1987 = vmatpush3.msra.mxu1 %v1467_v54 }
 0x3da   : > { %1988 = vmatprep.subr.mxu1 %v2347_v0 }
 0x424   : > { %v842_v19 = vpop.f32.mrf.mxu1 }
 0x426   : > { %v1940_v20 = vpop.f32.mrf.mxu1 }
 0x48c   : > { %v1008_v25 = vpop.f32.mrf.mxu1 }
 0x48d   : > { %1343 = vrot.lane.b32.xlu1 %v1008_v25, %s2352_s14  ;;  %s2264_s14 = sshll.u32 %s2355_s27, 4  ;;  %s2265_s14 = int_to_ptr.vmem [resolvable:$false] %s2264_s14 }
 0x48e   : > { %v1950_v26 = vpop.f32.mrf.mxu1  ;;  %s2266_s13 = scalar_lea.vmem %s2265_s14, 256  ;;  %p2267_p2 = scmp.lt.s32.totalorder %s1677_s21, %s2265_s14 }
 0x48f   : > { %p2268_p9 = scmp.lt.s32.totalorder %s2266_s13, %s2260_s22 }
 0x490   : > { %v1173_v27 = vpop.f32.mrf.mxu1 }
 0x491   : > { %1347 = vrot.lane.b32.xlu0 %v1173_v27, %s2353_s24  ;;  %p2269_p1 = por %p2268_p9, %p2267_p2 }
 0x492   : > { %v1960_v28 = vpop.f32.mrf.mxu1 }
 0x493   : > { %p2270_p4 = pnand %p2269_p1, %p2263_p10 }
 0x494   : > { %v1338_v29 = vpop.f32.mrf.mxu1 }
 0x495   : > { %1351 = vrot.lane.b32.xlu1 %v1338_v29, %s2354_s4 }
 0x496   : > { %v1970_v30 = vpop.f32.mrf.mxu1 }
 0x4ff   : > { %v1344_v31 = vpop.permute.xlu1 %1343 }
 0x500   : > { %v1354_v33 = vsel %vm685_vm2, %v842_v19, %v1344_v31  ;;  %v1653_v31 = vsub.s32 4, %v2732_v38 }
 0x503   : > { %v1348_v32 = vpop.permute.xlu0 %1347 }
 0x504   : > { %v1356_v34 = vsel %vm1355_vm3, %v1354_v33, %v1348_v32  ;;  %v1658_v32 = vsub.s32 5, %v2732_v38  ;;  %v1654_v33 = vrot.slane %v2738_v40, %v1653_v31 }
 0x507   : > { %v1352_v35 = vpop.permute.xlu1 %1351 }
 0x508   : > { %v1358_v36 = vsel %vm1357_vm4, %v1356_v34, %v1352_v35 }
 0x509   : > { %1980 = vmatmul.mubr.msk.f32.vlgmr.msra.gmra.mxu0 %vm442_vm1, %v1358_v36  ;;  %v1659_v36 = vrot.slane %v2738_v40, %v1658_v32 }
 0x50a   : > { %2009 = vmatprep.mubr.msk.f32.mxu0 %vm2348_vm0, %v2347_v0  ;;  %1994 = vmatpush3.msra.mxu0 %v1558_v55 }
 0x50b   : > { %1995 = vmatprep.subr.mxu0 %v2347_v0 }
 0x50c   : > { %1996 = vmatpush3.msra.mxu0 %v1557_v56 }
 0x50d   : > { %1997 = vmatprep.subr.mxu0 %v2347_v0 }
 0x50e   : > { %1998 = vmatpush3.msra.mxu0 %v1556_v57 }
 0x50f   : > { %1999 = vmatprep.subr.mxu0 %v2347_v0 }
 0x510   : > { %2000 = vmatpush3.msra.mxu0 %v1555_v58 }
 0x511   : > { %2001 = vmatprep.subr.mxu0 %v2347_v0 }
 0x512   : > { %2002 = vmatpush3.msra.mxu0 %v1554_v59 }
 0x513   : > { %2003 = vmatprep.subr.mxu0 %v2347_v0 }
 0x514   : > { %2004 = vmatpush3.msra.mxu0 %v1553_v9 }
 0x515   : > { %2005 = vmatprep.subr.mxu0 %v2347_v0 }
 0x516   : > { %2006 = vmatpush3.msra.mxu0 %v1552_v10 }
 0x517   : > { %2007 = vmatprep.subr.mxu0 %v2347_v0 }
 0x518   : > { %2008 = vmatpush3.msra.mxu0 %v1551_v11 }
 0x5c9   : > { %v1437_v42 = vpop.f32.mrf.mxu0 }
 0x5ca   : > { %v1438_v43 = vadd.f32 %v1437_v42, %v1367_v41 }
 0x5cb   : > { %v1981_v44 = vpop.f32.mrf.mxu0 }
 0x5cc   : > { %v1441_v45 = vadd.f32 %v1438_v43, %v2610_v3  ;;  %v1466_v3 = vld [vmem:[#allocation10] sm:$0xff] }
 0x5cd   : > { %1989 = vmatpush3.msra.mxu1 %v1466_v3 }
 0x5ce   : > { %v1442_v46 = vsel %vm442_vm1, %v1441_v45, 0.0 }
 0x5cf   : > { %1443 = vadd.xlane.f32.xlu0 %v1442_v46 }
 0x658   : > { %v1444_v47 = vpop.xlane.xlu0 %1443 }
 0x659   : > { %v1446_v48 = vmul.f32 0.03125, %v1444_v47 }
 0x65b   : > { %v1447_v49 = vsub.f32 %v1441_v45, %v1446_v48 }
 0x65d   : > { %v1448_v50 = vmul.f32 %v1447_v49, %v1447_v49 }
 0x65f   : > { %v1449_v51 = vsel %vm442_vm1, %v1448_v50, 0.0 }
 0x660   : > { %1450 = vadd.xlane.f32.xlu1 %v1449_v51 }
 0x6e9   : > { %v1451_v60 = vpop.xlane.xlu1 %1450 }
 0x6ea   : > { %v1452_v61 = vmul.f32 0.03125, %v1451_v60 }
 0x6ec   : > { %v1453_v62 = vadd.f32 1e-05, %v1452_v61 }
 0x6ee   : > { %2122 = vrsqrt.f32 %v1453_v62 }
 0x6fb   : > { %v2123_v4 = vpop.eup %2122 }
 0x6fc   : > { %v1455_v5 = vmul.f32 %v2123_v4, %v1447_v49 }
 0x6fe   : > { %v1460_v7 = vmul.f32 %v1459_v2, %v1455_v5 }
 0x700   : > { %v1465_v8 = vadd.f32 %v1464_v6, %v1460_v7 }
 0x702   : > { %1991 = vmatmul.mubr.msk.f32.vlgmr.msra.gmra.mxu1 %vm442_vm1, %v1465_v8 }
 0x7c2   : > { %v1546_v13 = vpop.f32.mrf.mxu1 }
 0x7c3   : > { %v1547_v14 = vadd.f32 %v1841_v12, %v1546_v13 }
 0x7c4   : > { %v1992_v15 = vpop.f32.mrf.mxu1 }
 0x7c5   : > { %v1550_v16 = vmax.f32 %v1547_v14, 0.0 }
 0x7c7   : > { %2010 = vmatmul.mubr.msk.f32.vlgmr.msra.gmra.mxu0 %vm1563_vm5, %v1550_v16 }
 0x887   : > { %v1633_v19 = vpop.f32.mrf.mxu0 }
 0x888   : > { %v1634_v20 = vadd.f32 %v1633_v19, %v1562_v18 }
 0x889   : > { %v2011_v21 = vpop.f32.mrf.mxu0 }
 0x88a   : > { %v1637_v22 = vadd.f32 %v1634_v20, %v1465_v8 }
 0x88c   : > { %v1638_v0 = vsel %vm442_vm1, %v1637_v22, 0.0 }
 0x88d   : > { %1639 = vadd.xlane.f32.xlu0 %v1638_v0 }
 0x916   : > { %v1640_v23 = vpop.xlane.xlu0 %1639 }
 0x917   : > { %v1641_v24 = vmul.f32 0.03125, %v1640_v23 }
 0x919   : > { %v1642_v25 = vsub.f32 %v1637_v22, %v1641_v24 }
 0x91b   : > { %v1643_v26 = vmul.f32 %v1642_v25, %v1642_v25 }
 0x91d   : > { %v1644_v27 = vsel %vm442_vm1, %v1643_v26, 0.0 }
 0x91e   : > { %1645 = vadd.xlane.f32.xlu0 %v1644_v27 }
 0x9a7   : > { %v1646_v28 = vpop.xlane.xlu0 %1645 }
 0x9a8   : > { %v1647_v29 = vmul.f32 0.03125, %v1646_v28 }
 0x9aa   : > { %v1648_v30 = vadd.f32 1e-05, %v1647_v29 }
 0x9ac   : > { %2124 = vrsqrt.f32 %v1648_v30 }
 0x9b9   : > { %v2125_v34 = vpop.eup %2124 }
 0x9ba   : > { %v1650_v35 = vmul.f32 %v2125_v34, %v1642_v25 }
 0x9bc   : > { %v1655_v37 = vmul.f32 %v1654_v33, %v1650_v35 }
 0x9be   : > { %v1660_v39 = vadd.f32 %v1659_v36, %v1655_v37 }
 0x9c0   : > { %1661 = vst.msk [vmem:[%s427_s3] sm:$0xff] %vm442_vm1, %v1660_v39 }
 0x9c1   : > { %2273 = shalt.err (!%p2270_p4)
}
 0x9c2   : > { %s2274_s25 = scalar_lea.hbm %s1674_s26, 128  ;;  %s2278_s4 = scalar_lea.hbm %s2840_s9, 256 }
 0x9c3   : > { %p2275_p6 = scmp.ne.s32.totalorder %s1674_s26, %s2274_s25  ;;  %p2279_p8 = scmp.lt.s32.totalorder %s1674_s26, %s2840_s9 }
 0x9c4   : > { %p2280_p3 = scmp.lt.s32.totalorder %s2278_s4, %s2274_s25 }
 0x9c5   : > { %p2276_p7 = pnand %p2275_p6, %p2869_p0 }
 0x9c6   : > { %p2281_p12 = por %p2280_p3, %p2279_p8 }
 0x9c7   : > { %p2277_p11 = pneg %p2276_p7 }
 0x9c9   : > { %p2282_p13 = pnand %p2281_p12, %p2277_p11 }
 0x9cb   : > { %2285 = shalt.err (!%p2282_p13)
}
 0x9cc   : > { %2028 = dma.vmem_to_hbm [thread:$0]  (%p2869_p0), %s1677_s21, 128, %s1674_s26, %s1663_s18  }
 0x9cd PF: > { %s1688_s15 = sand.u32 1, %s2324_s30   ;;  %p2870_p5 = scmp.ne.s32.totalorder %s2853_s16, 0 }
 0x9ce   : > { %p2871_p10 = scmp.ge.s32.totalorder %s2336_s12, 2  ;;  %s1689_s20 = scalar_lea.sflag [#allocation4], %s1688_s15 }
 0x9d0   : > { %p2048_p2 = pnand %p2871_p10, %p2870_p5 }
 0x9d2   : > { %p2049_p9 = pneg %p2048_p2 }
 0x9d4   : > { %2319 = dma.done.wait (%p2049_p9), %s1689_s20, 128  }
 0x9d5   : > { %2321 = vsyncadd (%p2049_p9), %s1689_s20, 4294967168  ;;  %s2872_s12 = sld [smem:[#allocation18_spill]]  ;;  %s2875_s30 = smov %s2328_s10 }
 0x9d6   : > { %s2873_s29 = sld [smem:[#allocation17_spill]] }
 0x9d7   : > { %s2874_s11 = sld [smem:[#allocation19_spill]] }
 0x9db   : > { %p26_p1 = scmp.ge.s32.totalorder %s2872_s12, 4  }
 0x9dc   : > { %s2876_s10 = smov %s2873_s29 }
 0x9dd   :  { %28 = sbr.rel (!%p26_p1) target bundleno = 12 (0xc), region = 130 }
 0x9e2   :  { %1694 = vsyncpa [#allocation3], 1 }
 0x9e3   :  { %1696 = vsyncpa [#allocation3 + $0x1], 1 }
 0x9e4   :  { %1697 = vsyncpa [#allocation6], 1 }
 0x9e5   :  { %1699 = vsyncpa [#allocation6 + $0x1], 1 }
 0x9e6   :  { %1700 = vsyncpa [#allocation9], 1 }
 0x9e7   :  { %1701 = vsyncpa [#allocation4], 1 }
 0x9e8   :  { %1703 = vsyncpa [#allocation4 + $0x1], 1 }

</bundles_post_ra>
